<compile_context>
chip_gen: v6e
topology: v6e:2x2x1
jax: 0.10.0
libtpu: 0.0.40
codegen_flags: <defaults>
</compile_context>

<pallas_src>
import math

import jax
import jax.numpy as jnp
from jax.experimental import pallas as pl
from jax.experimental.pallas import tpu as pltpu

FREQ_EMBED = 256            # frequency_embedding_size (even)
HALF = FREQ_EMBED // 2      # 128 == one lane tile
MAX_PERIOD = 10000.0
LANE = 128


def _round_up(x, m):
    return ((x + m - 1) // m) * m


def _timestep_embedder_kernel(t_ref, freqs_ref, w1t_ref, b1_ref, w2t_ref, b2_ref,
                              o_ref):
    # t: (tile_n, 1) f32, freqs: (1, HALF) f32
    args = t_ref[...] * freqs_ref[...]                 # (tile_n, HALF)
    cos_e = jnp.cos(args).astype(w1t_ref.dtype)
    sin_e = jnp.sin(args).astype(w1t_ref.dtype)

    # mlp[0]: h = [cos | sin] @ W1^T + b1, with the concat replaced by two
    # K=HALF matmuls against static (tile-aligned) row slices of w1t.
    h = jnp.dot(cos_e, w1t_ref[:HALF, :], preferred_element_type=jnp.float32)
    h = h + jnp.dot(sin_e, w1t_ref[HALF:, :], preferred_element_type=jnp.float32)
    h = h + b1_ref[...]

    # mlp[1]: SiLU
    h = h * jax.nn.sigmoid(h)

    # mlp[2]: Linear(H -> H)
    out = jnp.dot(h.astype(w2t_ref.dtype), w2t_ref[...],
                  preferred_element_type=jnp.float32)
    out = out + b2_ref[...]
    o_ref[...] = out.astype(o_ref.dtype)


def prepare_params(w1, b1, w2, b2, *, weight_dtype=jnp.bfloat16):
    """One-time (init-time) parameter packing.

    Pads hidden up to a multiple of 128 (zero padding is exact: SiLU(0) == 0),
    transposes to (K, N) matmul layout, casts weights to bf16, and precomputes
    the sinusoidal frequency table. NONE of this runs in the hot path.

    w1: (H, FREQ_EMBED), b1: (H,), w2: (H, H), b2: (H,)
    """
    hidden = w1.shape[0]
    h_pad = max(LANE, _round_up(hidden, LANE))
    pad = h_pad - hidden

    w1t = jnp.pad(w1, ((0, pad), (0, 0))).T.astype(weight_dtype)    # (FREQ, H_pad)
    w2t = jnp.pad(w2, ((0, pad), (0, pad))).T.astype(weight_dtype)  # (H_pad, H_pad)
    b1p = jnp.pad(b1, (0, pad)).reshape(1, h_pad).astype(jnp.float32)
    b2p = jnp.pad(b2, (0, pad)).reshape(1, h_pad).astype(jnp.float32)
    freqs = jnp.exp(
        (-math.log(MAX_PERIOD) / HALF) * jnp.arange(HALF, dtype=jnp.float32)
    ).reshape(1, HALF)

    return {"w1t": w1t, "b1": b1p, "w2t": w2t, "b2": b2p, "freqs": freqs,
            "hidden": hidden, "h_pad": h_pad}


def timestep_embedder(t, params, *, tile_n=256):
    """t: (N,) float-ish; params from prepare_params(). Returns (N, hidden) f32."""
    n = t.shape[0]
    hidden, h_pad = params["hidden"], params["h_pad"]

    if n <= tile_n:
        tile_n = _round_up(max(n, 1), 8)
    n_pad = _round_up(n, tile_n)

    t2 = t.astype(jnp.float32).reshape(n, 1)
    if n_pad != n:
        t2 = jnp.pad(t2, ((0, n_pad - n), (0, 0)))

    # Explicit VMEM budget (weights + double-buffered I/O + f32 activations),
    # clamped so it is valid on v5e/v6e (128 MiB) and v7x (64 MiB).
    wbytes = params["w1t"].dtype.itemsize
    weight_bytes = (FREQ_EMBED * h_pad + h_pad * h_pad) * wbytes
    io_bytes = tile_n * (1 + h_pad) * 4 + 2 * h_pad * 4 + HALF * 4
    act_bytes = tile_n * (2 * FREQ_EMBED + 2 * h_pad) * 4
    budget = 2 * (weight_bytes + io_bytes) + act_bytes + (2 << 20)
    vmem_limit = int(min(max(budget, 8 << 20), 64 << 20))

    out_pad = pl.pallas_call(
        _timestep_embedder_kernel,
        out_shape=jax.ShapeDtypeStruct((n_pad, h_pad), jnp.float32),
        grid_spec=pltpu.PrefetchScalarGridSpec(
            num_scalar_prefetch=0,
            grid=(n_pad // tile_n,),
            in_specs=[
                pl.BlockSpec((tile_n, 1), lambda i: (i, 0)),          # t rows
                pl.BlockSpec((1, HALF), lambda i: (0, 0)),            # freqs (const)
                pl.BlockSpec((FREQ_EMBED, h_pad), lambda i: (0, 0)),  # w1t resident
                pl.BlockSpec((1, h_pad), lambda i: (0, 0)),           # b1
                pl.BlockSpec((h_pad, h_pad), lambda i: (0, 0)),       # w2t resident
                pl.BlockSpec((1, h_pad), lambda i: (0, 0)),           # b2
            ],
            out_specs=pl.BlockSpec((tile_n, h_pad), lambda i: (i, 0)),
        ),
        compiler_params=pltpu.CompilerParams(
            dimension_semantics=("parallel",),
            vmem_limit_bytes=vmem_limit,
        ),
    )(t2, params["freqs"], params["w1t"], params["b1"], params["w2t"], params["b2"])

    if n_pad != n or h_pad != hidden:
        out_pad = out_pad[:n, :hidden]
    return out_pad


def _xavier_uniform(key, shape):
    fan_out, fan_in = shape
    bound = math.sqrt(6.0 / (fan_in + fan_out))
    return jax.random.uniform(key, shape, jnp.float32, minval=-bound, maxval=bound)


def _reference(t, w1, b1, w2, b2):
    """Pure-f32 reference matching the PyTorch module."""
    freqs = jnp.exp(
        -math.log(MAX_PERIOD) * jnp.arange(HALF, dtype=jnp.float32) / HALF
    )
    args = t[:, None].astype(jnp.float32) * freqs[None]
    emb = jnp.concatenate([jnp.cos(args), jnp.sin(args)], axis=-1)
    h = emb @ w1.T + b1
    h = h * jax.nn.sigmoid(h)
    return h @ w2.T + b2


if __name__ == "__main__":
    hidden = 32
    n = 8

    key = jax.random.PRNGKey(0)
    k_t, k_w1, k_w2 = jax.random.split(key, 3)

    # Deterministic init matching reset_parameters: xavier_uniform + zero bias.
    w1 = _xavier_uniform(k_w1, (hidden, FREQ_EMBED))
    b1 = jnp.zeros((hidden,), jnp.float32)
    w2 = _xavier_uniform(k_w2, (hidden, hidden))
    b2 = jnp.zeros((hidden,), jnp.float32)

    # Fractional timesteps, one per batch element.
    t = jax.random.uniform(k_t, (n,), jnp.float32, minval=0.0, maxval=1000.0)

    params = prepare_params(w1, b1, w2, b2)       # one-time init cost
    out = timestep_embedder(t, params)
    out = jax.block_until_ready(out)

    ref = _reference(t, w1, b1, w2, b2)
    assert out.shape == (n, hidden)
    # Tolerance loosened because weights/activations feed the MXU as bf16
    # (f32 accumulation), per the performance review.
    assert jnp.allclose(out, ref, atol=5e-2, rtol=5e-2), float(
        jnp.max(jnp.abs(out - ref)))

    print("KERNEL_OK")
</pallas_src>

<mosaic_0001>
module attributes {stable_mosaic.version = 11 : i64} {
  func.func @_timestep_embedder_kernel(%arg0: i32, %arg1: memref<8x1xf32, #tpu.memory_space<vmem>>, %arg2: memref<1x128xf32, #tpu.memory_space<vmem>>, %arg3: memref<256x128xbf16, #tpu.memory_space<vmem>>, %arg4: memref<1x128xf32, #tpu.memory_space<vmem>>, %arg5: memref<128x128xbf16, #tpu.memory_space<vmem>>, %arg6: memref<1x128xf32, #tpu.memory_space<vmem>>, %arg7: memref<8x128xf32, #tpu.memory_space<vmem>>) attributes {dimension_semantics = [#tpu.dimension_semantics<parallel>], iteration_bounds = array<i64: 1>, scalar_prefetch = 0 : i64, scratch_operands = 0 : i64, tpu.core_type = #tpu.core_type<tc>, window_params = [{transform_indices = @transform_0, window_bounds = array<i64: 8, 1>}, {pipeline_mode = #tpu.pipeline_mode<synchronous>, transform_indices = @transform_1, window_bounds = array<i64: 1, 128>}, {pipeline_mode = #tpu.pipeline_mode<synchronous>, transform_indices = @transform_2, window_bounds = array<i64: 256, 128>}, {pipeline_mode = #tpu.pipeline_mode<synchronous>, transform_indices = @transform_3, window_bounds = array<i64: 1, 128>}, {pipeline_mode = #tpu.pipeline_mode<synchronous>, transform_indices = @transform_4, window_bounds = array<i64: 128, 128>}, {pipeline_mode = #tpu.pipeline_mode<synchronous>, transform_indices = @transform_5, window_bounds = array<i64: 1, 128>}, {transform_indices = @transform_6, window_bounds = array<i64: 8, 128>}]} {
    %c0 = arith.constant 0 : index
    %c0_0 = arith.constant 0 : index
    %0 = vector.load %arg1[%c0, %c0_0] : memref<8x1xf32, #tpu.memory_space<vmem>>, vector<8x1xf32>
    %c0_1 = arith.constant 0 : index
    %c0_2 = arith.constant 0 : index
    %1 = vector.load %arg2[%c0_1, %c0_2] : memref<1x128xf32, #tpu.memory_space<vmem>>, vector<1x128xf32>
    %2 = vector.broadcast %0 : vector<8x1xf32> to vector<8x128xf32>
    %3 = vector.broadcast %1 : vector<1x128xf32> to vector<8x128xf32>
    %4 = arith.mulf %2, %3 : vector<8x128xf32>
    %5 = math.cos %4 : vector<8x128xf32>
    %6 = arith.truncf %5 : vector<8x128xf32> to vector<8x128xbf16>
    %7 = math.sin %4 : vector<8x128xf32>
    %8 = arith.truncf %7 : vector<8x128xf32> to vector<8x128xbf16>
    %c0_3 = arith.constant 0 : index
    %c0_4 = arith.constant 0 : index
    %9 = vector.load %arg3[%c0_3, %c0_4] : memref<256x128xbf16, #tpu.memory_space<vmem>>, vector<128x128xbf16>
    %cst = arith.constant dense<0.000000e+00> : vector<8x128xf32>
    %10 = tpu.matmul %6, %9, %cst {dimension_numbers = #tpu.dot_dimension_numbers<[1], [0], [0], [1], [0, 0, 1, 1], [], []>} : vector<8x128xbf16>, vector<128x128xbf16>, vector<8x128xf32> -> vector<8x128xf32>
    %c128 = arith.constant 128 : index
    %c0_5 = arith.constant 0 : index
    %11 = vector.load %arg3[%c128, %c0_5] : memref<256x128xbf16, #tpu.memory_space<vmem>>, vector<128x128xbf16>
    %cst_6 = arith.constant dense<0.000000e+00> : vector<8x128xf32>
    %12 = tpu.matmul %8, %11, %cst_6 {dimension_numbers = #tpu.dot_dimension_numbers<[1], [0], [0], [1], [0, 0, 1, 1], [], []>} : vector<8x128xbf16>, vector<128x128xbf16>, vector<8x128xf32> -> vector<8x128xf32>
    %13 = arith.addf %10, %12 : vector<8x128xf32>
    %c0_7 = arith.constant 0 : index
    %c0_8 = arith.constant 0 : index
    %14 = vector.load %arg4[%c0_7, %c0_8] : memref<1x128xf32, #tpu.memory_space<vmem>>, vector<1x128xf32>
    %15 = vector.broadcast %14 : vector<1x128xf32> to vector<8x128xf32>
    %16 = arith.addf %13, %15 : vector<8x128xf32>
    %17 = arith.negf %16 : vector<8x128xf32>
    %18 = math.exp %17 : vector<8x128xf32>
    %cst_9 = arith.constant 1.000000e+00 : f32
    %19 = vector.broadcast %cst_9 : f32 to vector<8x128xf32>
    %20 = arith.addf %19, %18 : vector<8x128xf32>
    %21 = arith.divf %19, %20 : vector<8x128xf32>
    %22 = arith.mulf %16, %21 : vector<8x128xf32>
    %23 = arith.truncf %22 : vector<8x128xf32> to vector<8x128xbf16>
    %c0_10 = arith.constant 0 : index
    %c0_11 = arith.constant 0 : index
    %24 = vector.load %arg5[%c0_10, %c0_11] : memref<128x128xbf16, #tpu.memory_space<vmem>>, vector<128x128xbf16>
    %cst_12 = arith.constant dense<0.000000e+00> : vector<8x128xf32>
    %25 = tpu.matmul %23, %24, %cst_12 {dimension_numbers = #tpu.dot_dimension_numbers<[1], [0], [0], [1], [0, 0, 1, 1], [], []>} : vector<8x128xbf16>, vector<128x128xbf16>, vector<8x128xf32> -> vector<8x128xf32>
    %c0_13 = arith.constant 0 : index
    %c0_14 = arith.constant 0 : index
    %26 = vector.load %arg6[%c0_13, %c0_14] : memref<1x128xf32, #tpu.memory_space<vmem>>, vector<1x128xf32>
    %27 = vector.broadcast %26 : vector<1x128xf32> to vector<8x128xf32>
    %28 = arith.addf %25, %27 : vector<8x128xf32>
    %c0_15 = arith.constant 0 : index
    %c0_16 = arith.constant 0 : index
    %29 = vector.load %arg7[%c0_15, %c0_16] : memref<8x128xf32, #tpu.memory_space<vmem>>, vector<8x128xf32>
    tpu.vector_store %arg7[%c0_15, %c0_16], %28 {strides = array<i32>} : memref<8x128xf32, #tpu.memory_space<vmem>>, vector<8x128xf32>,
    return
  }
  func.func @transform_0(%arg0: i32) -> (i32, i32) {
    %c0_i32 = arith.constant 0 : i32
    %c0_i32_0 = arith.constant 0 : i32
    return %arg0, %c0_i32 : i32, i32
  }
  func.func @transform_1(%arg0: i32) -> (i32, i32) {
    %c0_i32 = arith.constant 0 : i32
    %c0_i32_0 = arith.constant 0 : i32
    %c0_i32_1 = arith.constant 0 : i32
    return %c0_i32, %c0_i32_0 : i32, i32
  }
  func.func @transform_2(%arg0: i32) -> (i32, i32) {
    %c0_i32 = arith.constant 0 : i32
    %c0_i32_0 = arith.constant 0 : i32
    %c0_i32_1 = arith.constant 0 : i32
    return %c0_i32, %c0_i32_0 : i32, i32
  }
  func.func @transform_3(%arg0: i32) -> (i32, i32) {
    %c0_i32 = arith.constant 0 : i32
    %c0_i32_0 = arith.constant 0 : i32
    %c0_i32_1 = arith.constant 0 : i32
    return %c0_i32, %c0_i32_0 : i32, i32
  }
  func.func @transform_4(%arg0: i32) -> (i32, i32) {
    %c0_i32 = arith.constant 0 : i32
    %c0_i32_0 = arith.constant 0 : i32
    %c0_i32_1 = arith.constant 0 : i32
    return %c0_i32, %c0_i32_0 : i32, i32
  }
  func.func @transform_5(%arg0: i32) -> (i32, i32) {
    %c0_i32 = arith.constant 0 : i32
    %c0_i32_0 = arith.constant 0 : i32
    %c0_i32_1 = arith.constant 0 : i32
    return %c0_i32, %c0_i32_0 : i32, i32
  }
  func.func @transform_6(%arg0: i32) -> (i32, i32) {
    %c0_i32 = arith.constant 0 : i32
    %c0_i32_0 = arith.constant 0 : i32
    return %arg0, %c0_i32 : i32, i32
  }
}

</mosaic_0001>

<bundles_post_ra>
// kernel: tpu_custom_call.1
= control target key start
LH: loop header
LB: loop body
LE: loop exit
PB: predicated region body
PF: predicated region fallthrough
CT: control target
= control target key end

     0   :  { %11 = vsyncpa [#allocation3], 0  ;;  %s989_s0 = inlined_call_operand.vmem [shape: f32[8,1], index: 0, kind: input, shape index: {}]   ;;  %s990_s1 = inlined_call_operand.vmem [shape: f32[1,128], index: 1, kind: input, shape index: {}]   ;;  %s991_s2 = inlined_call_operand.hbm [shape: bf16[256,128], index: 2, kind: input, shape index: {}]   ;;  %s992_s3 = inlined_call_operand.vmem [shape: f32[1,128], index: 3, kind: input, shape index: {}]   ;;  %s993_s4 = inlined_call_operand.hbm [shape: bf16[128,128], index: 4, kind: input, shape index: {}]   ;;  %s994_s5 = inlined_call_operand.vmem [shape: f32[1,128], index: 5, kind: input, shape index: {}]   ;;  %s995_s6 = inlined_call_operand.hbm [shape: f32[8,128], index: 6, kind: output, shape index: {}]  }
   0x1   :  { %12 = vsyncpa [#allocation6], 0 }
   0x2   :  { %13 = vsyncpa [#allocation4], 0  ;;  %s868_s21 = smov [#allocation2]  }
   0x3   :  { %s23_s22 = sshll.u32 %s868_s21, 4  ;;  %s24_s22 = int_to_ptr.vmem [resolvable:$true] %s23_s22 }
   0x4   :  { %s810_s23 = scalar_lea.vmem %s24_s22, 2048  ;;  %p815_p1 = scmp.lt.s32.totalorder %s24_s22, %s24_s22 }
   0x5   :  { %p811_p0 = scmp.ne.s32.totalorder %s24_s22, %s810_s23  ;;  %p816_p2 = scmp.lt.s32.totalorder %s810_s23, %s810_s23 }
   0x7   :  { %p817_p3 = por %p816_p2, %p815_p1 }
   0x9   :  { %p818_p4 = pnand %p817_p3, %p811_p0 }
   0xb   :  { %821 = shalt.err (!%p818_p4)
}
   0xc   :  { %s869_s24 = smov 64   ;;  %s870_s25 = smov 4  }
   0xd   :  { %29 = dma.hbm_to_vmem [thread:$0]  %s991_s2, 2048, %s24_s22, [#allocation3], %s869_s24, %s869_s24, %s870_s25  }
   0xe   :  { %s871_s28 = smov [#allocation5]  }
   0xf   :  { %s37_s29 = sshll.u32 %s871_s28, 4  ;;  %s38_s29 = int_to_ptr.vmem [resolvable:$true] %s37_s29 }
  0x10   :  { %s830_s30 = scalar_lea.vmem %s38_s29, 1024  ;;  %p835_p6 = scmp.lt.s32.totalorder %s38_s29, %s38_s29 }
  0x11   :  { %p831_p5 = scmp.ne.s32.totalorder %s38_s29, %s830_s30  ;;  %p836_p7 = scmp.lt.s32.totalorder %s830_s30, %s830_s30 }
  0x13   :  { %p837_p8 = por %p836_p7, %p835_p6 }
  0x15   :  { %p838_p9 = pnand %p837_p8, %p831_p5 }
  0x17   :  { %841 = shalt.err (!%p838_p9)
}
  0x18   :  { %43 = dma.hbm_to_vmem [thread:$0]  %s993_s4, 1024, %s38_s29, [#allocation6], %s869_s24, %s869_s24, %s870_s25  }
  0x19   :  { %862 = dma.done.wait [#allocation3], 2048  }
  0x1a   :  { %863 = vsyncadd [#allocation3], 4294965248 }
  0x1b   :  { %864 = dma.done.wait [#allocation6], 1024  }
  0x1c   :  { %865 = vsyncadd [#allocation6], 4294966272  ;;  %v872_v0 = vmov 0   ;;  %v53_v1 = vld [vmem:[%s989_s0] sm:$0xff]  ;;  %v770_v2 = vld [vmem:[#allocation2 + $0x78] sm:$0xff]   ;;  %v873_v4 = vmov 0.0  }
  0x1d   :  { %769 = vset.pattern.permute.xlu0 %v872_v0  ;;  %v771_v3 = vld [vmem:[#allocation2 + $0x38] sm:$0xff]   ;;  %691 = vmatprep.subr.bf16.mxu0 %v873_v4  ;;  %v772_v5 = vld [vmem:[#allocation2 + $0x70] sm:$0xff]   ;;  %v774_v7 = vld [vmem:[#allocation2 + $0x68] sm:$0xff]   ;;  %vm874_vm0 = vmmov 0   ;;  %v875_v32 = vmov 683565275  }
  0x1e   :  { %57 = vperm.xlu0 %769, %v53_v1   ;;  %711 = vmatprep.subr.bf16.mxu1 %v873_v4  ;;  %v773_v6 = vld [vmem:[#allocation2 + $0x30] sm:$0xff]   ;;  %v775_v8 = vld [vmem:[#allocation2 + $0x28] sm:$0xff]   ;;  %v776_v9 = vld [vmem:[#allocation2 + $0x60] sm:$0xff]   ;;  %v876_v34 = vmov 2475754826  }
  0x1f   :  { %692 = vmatpush3.bf16.msra.mxu0 %v770_v2  ;;  %712 = vmatpush3.bf16.msra.mxu1 %v771_v3  ;;  %v777_v10 = vld [vmem:[#allocation2 + $0x20] sm:$0xff]   ;;  %v778_v11 = vld [vmem:[#allocation2 + $0x58] sm:$0xff]   ;;  %v780_v13 = vld [vmem:[#allocation2 + $0x50] sm:$0xff]   ;;  %v877_v37 = vmov 2131351028  }
  0x20   :  { %693 = vmatprep.subr.bf16.mxu0 %v873_v4  ;;  %713 = vmatprep.subr.bf16.mxu1 %v873_v4  ;;  %v779_v12 = vld [vmem:[#allocation2 + $0x18] sm:$0xff]   ;;  %v781_v14 = vld [vmem:[#allocation2 + $0x10] sm:$0xff]   ;;  %v782_v15 = vld [vmem:[#allocation2 + $0x48] sm:$0xff]   ;;  %v878_v40 = vmov 2102212464  }
  0x21   :  { %707 = vmatprep.mubr.msk.bf16.mxu0 %vm874_vm0, %v873_v4  ;;  %727 = vmatprep.mubr.msk.bf16.mxu1 %vm874_vm0, %v873_v4  ;;  %v783_v16 = vld [vmem:[#allocation2 + $0x8] sm:$0xff]   ;;  %v784_v17 = vld [vmem:[#allocation2 + $0x40] sm:$0xff]   ;;  %v879_v43 = vmov 920167782   ;;  %v880_v46 = vmov 1326507024  }
  0x22   :  { %v785_v18 = vld [vmem:[#allocation2] sm:$0xff]  }
  0x23   :  { %694 = vmatpush3.bf16.msra.mxu0 %v772_v5  ;;  %714 = vmatpush3.bf16.msra.mxu1 %v773_v6  ;;  %v628_v19 = vld [vmem:[%s990_s1] ss:$0 sm:$0xff] }
  0x24   :  { %695 = vmatprep.subr.bf16.mxu0 %v873_v4  ;;  %715 = vmatprep.subr.bf16.mxu1 %v873_v4 }
  0x27   :  { %696 = vmatpush3.bf16.msra.mxu0 %v774_v7  ;;  %716 = vmatpush3.bf16.msra.mxu1 %v775_v8 }
  0x28   :  { %697 = vmatprep.subr.bf16.mxu0 %v873_v4  ;;  %717 = vmatprep.subr.bf16.mxu1 %v873_v4 }
  0x2b   :  { %698 = vmatpush3.bf16.msra.mxu0 %v776_v9  ;;  %718 = vmatpush3.bf16.msra.mxu1 %v777_v10 }
  0x2c   :  { %699 = vmatprep.subr.bf16.mxu0 %v873_v4  ;;  %719 = vmatprep.subr.bf16.mxu1 %v873_v4 }
  0x2f   :  { %700 = vmatpush3.bf16.msra.mxu0 %v778_v11  ;;  %720 = vmatpush3.bf16.msra.mxu1 %v779_v12 }
  0x30   :  { %701 = vmatprep.subr.bf16.mxu0 %v873_v4  ;;  %721 = vmatprep.subr.bf16.mxu1 %v873_v4 }
  0x33   :  { %702 = vmatpush3.bf16.msra.mxu0 %v780_v13  ;;  %722 = vmatpush3.bf16.msra.mxu1 %v781_v14 }
  0x34   :  { %703 = vmatprep.subr.bf16.mxu0 %v873_v4  ;;  %723 = vmatprep.subr.bf16.mxu1 %v873_v4 }
  0x37   :  { %704 = vmatpush3.bf16.msra.mxu0 %v782_v15  ;;  %724 = vmatpush3.bf16.msra.mxu1 %v783_v16 }
  0x38   :  { %705 = vmatprep.subr.bf16.mxu0 %v873_v4  ;;  %725 = vmatprep.subr.bf16.mxu1 %v873_v4 }
  0x3b   :  { %706 = vmatpush3.bf16.msra.mxu0 %v784_v17  ;;  %726 = vmatpush3.bf16.msra.mxu1 %v785_v18 }
  0x3c   :  { %731 = vmatprep.subr.bf16.mxu0 %v873_v4 }
  0x99   :  { %v58_v20 = vpop.permute.xlu0 %57 }
  0x9a   :  { %v950_v21 = vmul.f32 %v628_v19, %v58_v20 }
  0x9c   :  { %v70_v22 = vand.u32 2139095040, %v950_v21  ;;  %v67_v26 = vand.u32 2147483647, %v950_v21  ;;  %vm69_vm8 = vcmp.lt.s32.totalorder %v950_v21, 0 }
  0x9e   :  { %v71_v23 = vshrl.u32 %v70_v22, 23  ;;  %v74_v29 = vand.u32 8388607, %v67_v26  ;;  %vm68_vm9 = vcmp.le.f32.partialorder %v67_v26, 0.7853982 }
  0xa0   :  { %v629_v24 = vadd.s32 4294967169, %v71_v23  ;;  %v75_v48 = vor.u32 8388608, %v74_v29 }
  0xa2   :  { %v77_v25 = vadd.s32 1, %v629_v24  ;;  %v115_v62 = vshll.u32 %v75_v48, 8 }
  0xa4   :  { %vm78_vm1 = vcmp.gt.s32.totalorder %v77_v25, 0 }
  0xa5   :  { %v79_v27 = vsel %vm78_vm1, %v77_v25, 0  ;;  %vm159_vm1 = vweird.f32 %v950_v21 }
  0xa6   :  { %v81_v28 = vand.u32 31, %v79_v27  ;;  %v80_v31 = vshrl.u32 %v79_v27, 5 }
  0xa8   :  { %v82_v30 = vsub.s32 32, %v81_v28  ;;  %v84_v33 = vshll.u32 %v875_v32, %v81_v28  ;;  %v87_v35 = vshll.u32 %v876_v34, %v81_v28  ;;  %v90_v39 = vshll.u32 %v877_v37, %v81_v28 }
  0xa9   :  { %v93_v42 = vshll.u32 %v878_v40, %v81_v28  ;;  %v96_v45 = vshll.u32 %v879_v43, %v81_v28  ;;  %vm99_vm2 = vcmp.lt.s32.totalorder %v80_v31, 1  ;;  %vm102_vm3 = vcmp.lt.s32.totalorder %v80_v31, 4 }
  0xaa   :  { %v85_v36 = vshrl.u32 %v876_v34, %v82_v30  ;;  %v88_v38 = vshrl.u32 %v877_v37, %v82_v30  ;;  %v91_v41 = vshrl.u32 %v878_v40, %v82_v30  ;;  %v94_v44 = vshrl.u32 %v879_v43, %v82_v30 }
  0xab   :  { %v97_v47 = vshrl.u32 %v880_v46, %v82_v30  ;;  %v83_v57 = vshrl.u32 %v875_v32, %v82_v30  ;;  %vm101_vm4 = vcmp.lt.s32.totalorder %v80_v31, 3  ;;  %vm100_vm5 = vcmp.lt.s32.totalorder %v80_v31, 2 }
  0xac   :  { %v86_v49 = vor.u32 %v85_v36, %v84_v33  ;;  %v89_v50 = vor.u32 %v88_v38, %v87_v35  ;;  %v92_v51 = vor.u32 %v91_v41, %v90_v39  ;;  %v95_v52 = vor.u32 %v94_v44, %v93_v42 }
  0xad   :  { %v98_v53 = vor.u32 %v97_v47, %v96_v45 }
  0xae   :  { %v104_v54 = vsel %vm102_vm3, %v92_v51, 2102212464  ;;  %v107_v55 = vsel %vm99_vm2, %v86_v49, %v89_v50  ;;  %v111_v56 = vsel %vm99_vm2, %v89_v50, %v92_v51  ;;  %v108_v58 = vsel %vm102_vm3, %v95_v52, 920167782 }
  0xaf   :  { %v112_v59 = vsel %vm102_vm3, %v98_v53, 1326507024  ;;  %v109_v60 = vsel %vm101_vm4, %v92_v51, %v108_v58  ;;  %v103_v63 = vsel %vm99_vm2, %v83_v57, %v86_v49  ;;  %v105_v0 = vsel %vm101_vm4, %v89_v50, %v104_v54  ;;  %v786_v58 = vld [vmem:[#allocation5 + $0x38] sm:$0xff]  }
  0xb0   :  { %v113_v61 = vsel %vm101_vm4, %v95_v52, %v112_v59  ;;  %v110_v1 = vsel %vm100_vm5, %v107_v55, %v109_v60  ;;  %v106_v8 = vsel %vm100_vm5, %v103_v63, %v105_v0  ;;  %v787_v59 = vld [vmem:[#allocation5 + $0x30] sm:$0xff]   ;;  %v789_v60 = vld [vmem:[#allocation5 + $0x20] sm:$0xff]   ;;  %v792_v63 = vld [vmem:[#allocation5 + $0x8] sm:$0xff]  }
  0xb1   :  { %v114_v2 = vsel %vm100_vm5, %v111_v56, %v113_v61  ;;  %v959_v6 = vmul.u32.u64.low %v115_v62, %v110_v1  ;;  %v960_v7 = vmul.u32.u64.high %v115_v62, %v110_v1, %v959_v6  ;;  %v122_v10 = vmul.u32 %v115_v62, %v106_v8  ;;  %v790_v61 = vld [vmem:[#allocation5 + $0x18] sm:$0xff]   ;;  %v793_v0 = vld [vmem:[#allocation5] sm:$0xff]  }
  0xb2   :  { %v956_v3 = vmul.u32.u64.low %v115_v62, %v114_v2  ;;  %v957_v5 = vmul.u32.u64.high %v115_v62, %v114_v2, %v956_v3  ;;  %v791_v62 = vld [vmem:[#allocation5 + $0x10] sm:$0xff]  }
  0xb3   :  { %v125_v9 = vadd.s32 1, %v960_v7  ;;  %v653_v3 = vld [vmem:[%s992_s3] ss:$0 sm:$0xff]  ;;  %s881_s3 = smov [#allocation7]  }
  0xb4   :  { %vm124_vm6 = vc.u32 %v957_v5, %v959_v6  ;;  %v123_v23 = vadd.s32 %v959_v6, %v957_v5  ;;  %s618_s13 = sshll.u32 %s881_s3, 4  ;;  %s619_s13 = int_to_ptr.vmem [resolvable:$true] %s618_s13 }
  0xb5   :  { %v126_v11 = vsel %vm124_vm6, %v125_v9, %v960_v7  ;;  %s842_s14 = scalar_lea.vmem %s619_s13, 128  ;;  %p847_p11 = scmp.lt.s32.totalorder %s619_s13, %s619_s13 }
  0xb6   :  { %v127_v12 = vadd.s32 %v126_v11, %v122_v10  ;;  %p843_p10 = scmp.ne.s32.totalorder %s619_s13, %s842_s14  ;;  %p848_p12 = scmp.lt.s32.totalorder %s842_s14, %s842_s14 }
  0xb8   :  { %v128_v13 = vadd.s32 536870912, %v127_v12  ;;  %p849_p13 = por %p848_p12, %p847_p11 }
  0xba   :  { %v129_v14 = vshrl.u32 %v128_v13, 30  ;;  %p850_p0 = pnand %p849_p13, %p843_p10 }
  0xbc   :  { %v130_v15 = vshll.u32 %v129_v14, 30  ;;  %v153_v37 = vsub.s32 4, %v129_v14 }
  0xbe   :  { %v131_v16 = vsub.s32 %v127_v12, %v130_v15  ;;  %v154_v40 = vsel %vm69_vm8, %v153_v37, %v129_v14 }
  0xbf   :  { %v156_v41 = vsel %vm68_vm9, 0, %v154_v40 }
  0xc0   :  { %v133_v17 = vsub.s32 0, %v131_v16  ;;  %v264_v42 = vadd.s32 3, %v156_v41  ;;  %v160_v44 = vand.u32 3, %v156_v41 }
  0xc2   :  { %v630_v18 = vmin.u32 %v133_v17, %v131_v16  ;;  %v265_v43 = vand.u32 3, %v264_v42  ;;  %vm165_vm11 = vcmp.eq.s32.totalorder %v160_v44, 2  ;;  %vm162_vm13 = vcmp.eq.s32.totalorder %v160_v44, 0 }
  0xc3   :  { %vm161_vm15 = vcmp.lt.s32.totalorder %v160_v44, 2 }
  0xc4   :  { %v135_v19 = vclz %v630_v18  ;;  %vm270_vm10 = vcmp.eq.s32.totalorder %v265_v43, 2  ;;  %vm267_vm12 = vcmp.eq.s32.totalorder %v265_v43, 0  ;;  %vm266_vm14 = vcmp.lt.s32.totalorder %v265_v43, 2  ;;  %v655_v18 = vld [vmem:[%s994_s5] ss:$0 sm:$0xff] }
  0xc6   :  { %v631_v20 = vadd.s32 4294967294, %v135_v19 }
  0xc8   :  { %vm632_vm7 = vcmp.lt.s32.totalorder %v631_v20, 0 }
  0xc9   :  { %v138_v22 = vsel %vm632_vm7, 0, %v631_v20 }
  0xca   :  { %v139_v24 = vsub.s32 32, %v138_v22  ;;  %v143_v25 = vsub.s32 4294967266, %v138_v22  ;;  %v140_v27 = vshll.u32 %v131_v16, %v138_v22 }
  0xcc   :  { %v141_v28 = vshrl.u32 %v123_v23, %v139_v24  ;;  %v144_v29 = vadd.s32 127, %v143_v25 }
  0xce   :  { %v142_v30 = vor.u32 %v141_v28, %v140_v27  ;;  %v145_v31 = vshll.u32 %v144_v29, 23 }
  0xd0   :  { %v146_v32 = vor.u32 4788187, %v145_v31  ;;  %v149_v34 = vcvt.s32.f32 %v142_v30 }
  0xd2   :  { %v147_v33 = vand.u32 2147483647, %v146_v32 }
  0xd4   :  { %v150_v35 = vmul.f32 %v149_v34, %v147_v33 }
  0xd6   :  { %v151_v36 = vxor.u32 2147483648, %v150_v35 }
  0xd8   :  { %v152_v38 = vsel %vm69_vm8, %v151_v36, %v150_v35 }
  0xd9   :  { %v155_v39 = vsel %vm68_vm9, %v950_v21, %v152_v38  ;;  %v788_v21 = vld [vmem:[#allocation5 + $0x28] sm:$0xff]  }
  0xda   :  { %794 = vcosq.f32 %v155_v39 }
  0xdb   :  { %796 = vsinq.f32 %v155_v39 }
  0xe7   :  { %v795_v45 = vpop.eup %794 }
  0xe8   :  { %v797_v46 = vpop.eup %796  ;;  %v166_v47 = vxor.u32 2147483648, %v795_v45 }
  0xe9   :  { %v163_v48 = vxor.u32 2147483648, %v797_v46 }
  0xea   :  { %v272_v49 = vsel %vm270_vm10, %v166_v47, %v797_v46  ;;  %v167_v26 = vsel %vm165_vm11, %v166_v47, %v797_v46 }
  0xeb   :  { %v269_v50 = vsel %vm267_vm12, %v795_v45, %v163_v48  ;;  %v164_v51 = vsel %vm162_vm13, %v795_v45, %v163_v48 }
  0xec   :  { %v273_v52 = vsel %vm266_vm14, %v269_v50, %v272_v49  ;;  %v168_v53 = vsel %vm161_vm15, %v164_v51, %v167_v26 }
  0xed   :  { %v274_v54 = vsel %vm159_vm1, nan, %v273_v52  ;;  %v169_v55 = vsel %vm159_vm1, nan, %v168_v53 }
  0xee   :  { %v275_v56 = vpack.c.bf16 %v274_v54, %v274_v54  ;;  %v170_v57 = vpack.c.bf16 %v169_v55, %v169_v55 }
  0xf0   :  { %708 = vmatmul.mubr.bf16.vlgmr.msra.gmra.mxu0 %v275_v56  ;;  %728 = vmatmul.mubr.bf16.vlgmr.msra.gmra.mxu1 %v170_v57 }
  0xf1   :  { %747 = vmatprep.mubr.msk.bf16.mxu0 %vm874_vm0, %v873_v4  ;;  %732 = vmatpush3.bf16.msra.mxu0 %v786_v58 }
  0xf2   :  { %733 = vmatprep.subr.bf16.mxu0 %v873_v4 }
  0xf5   :  { %734 = vmatpush3.bf16.msra.mxu0 %v787_v59 }
  0xf6   :  { %735 = vmatprep.subr.bf16.mxu0 %v873_v4 }
  0xf9   :  { %736 = vmatpush3.bf16.msra.mxu0 %v788_v21 }
  0xfa   :  { %737 = vmatprep.subr.bf16.mxu0 %v873_v4 }
  0xfd   :  { %738 = vmatpush3.bf16.msra.mxu0 %v789_v60 }
  0xfe   :  { %739 = vmatprep.subr.bf16.mxu0 %v873_v4 }
 0x101   :  { %740 = vmatpush3.bf16.msra.mxu0 %v790_v61 }
 0x102   :  { %741 = vmatprep.subr.bf16.mxu0 %v873_v4 }
 0x105   :  { %742 = vmatpush3.bf16.msra.mxu0 %v791_v62 }
 0x106   :  { %743 = vmatprep.subr.bf16.mxu0 %v873_v4 }
 0x109   :  { %744 = vmatpush3.bf16.msra.mxu0 %v792_v63 }
 0x10a   :  { %745 = vmatprep.subr.bf16.mxu0 %v873_v4 }
 0x10d   :  { %746 = vmatpush3.bf16.msra.mxu0 %v793_v0 }
 0x1b0   :  { %v390_v1 = vpop.f32.mrf.mxu0  ;;  %v478_v2 = vpop.f32.mrf.mxu1 }
 0x1b1   :  { %v479_v5 = vadd.f32 %v478_v2, %v390_v1 }
 0x1b2   :  { %v709_v6 = vpop.f32.mrf.mxu0  ;;  %v729_v7 = vpop.f32.mrf.mxu1 }
 0x1b3   :  { %v491_v8 = vadd.f32 %v653_v3, %v479_v5 }
 0x1b4   :  { %v393_v9 = vpop.f32.mrf.mxu0  ;;  %v481_v10 = vpop.f32.mrf.mxu1 }
 0x1b5   :  { %v654_v11 = vmul.f32 -1.442695, %v491_v8 }
 0x1b6   :  { %v710_v12 = vpop.f32.mrf.mxu0  ;;  %v730_v13 = vpop.f32.mrf.mxu1 }
 0x1b7   :  { %798 = vpow2.f32 %v654_v11 }
 0x1c4   :  { %v799_v14 = vpop.eup %798 }
 0x1c5   :  { %v495_v4 = vadd.f32 1.0, %v799_v14 }
 0x1c7   :  { %800 = vrcp.f32 %v495_v4 }
 0x1d4   :  { %v801_v15 = vpop.eup %800 }
 0x1d5   :  { %v498_v16 = vmul.f32 %v801_v15, %v491_v8 }
 0x1d7   :  { %v499_v17 = vpack.c.bf16 %v498_v16, %v498_v16 }
 0x1d9   :  { %748 = vmatmul.mubr.bf16.vlgmr.msra.gmra.mxu0 %v499_v17 }
 0x299   :  { %v605_v19 = vpop.f32.mrf.mxu0 }
 0x29a   :  { %v606_v20 = vadd.f32 %v655_v18, %v605_v19 }
 0x29b   :  { %v749_v22 = vpop.f32.mrf.mxu0 }
 0x29c   :  { %611 = vst [vmem:[#allocation7] sm:$0xff] %v606_v20 }
 0x29d   :  { %v608_v23 = vpop.f32.mrf.mxu0 }
 0x29e   :  { %853 = shalt.err (!%p850_p0)
}
 0x29f   :  { %621 = dma.vmem_to_hbm [thread:$0]  %s619_s13, 128, %s995_s6, [#allocation4]   ;;  %v750_v24 = vpop.f32.mrf.mxu0 }
 0x2a0   :  { %866 = dma.done.wait [#allocation4], 128  }
 0x2a1   :  { %867 = vsyncadd [#allocation4], 4294967168 }
 0x2a2   :  { %625 = vsyncpa [#allocation3], 1 }
 0x2a3   :  { %626 = vsyncpa [#allocation6], 1 }
 0x2a4   :  { %627 = vsyncpa [#allocation4], 1 }

</bundles_post_ra>
